<compile_context>
chip_gen: v6e
topology: v6e:2x2x1
jax: 0.10.0
libtpu: 0.0.40
codegen_flags: <defaults>
</compile_context>

<pallas_src>
import functools
import math

import jax
import jax.numpy as jnp
from jax.experimental import pallas as pl
from jax.experimental.pallas import tpu as pltpu

_SQRT2 = math.sqrt(2.0)


def _emo_mapping_kernel(z_ref, w_ref, b_ref, o_ref, act_ref, *, post_scale):
    """One (batch-tile, layer) grid step of the mapping MLP.

    z_ref   : (bm, D)     input latent tile (resident across the layer axis)
    w_ref   : (1, D, D)   this layer's weight, (in_dim, out_dim) layout, bf16
    b_ref   : (1, 1, D)   this layer's bias, already multiplied by lr_mul (f32)
    o_ref   : (bm, D)     output latent tile (written on the last layer only)
    act_ref : (bm, D)     f32 VMEM scratch carrying the activation across layers
    """
    layer = pl.program_id(1)
    n_layers = pl.num_programs(1)

    @pl.when(layer == 0)
    def _():
        # Pre-divide by sqrt(2) so a uniform post_scale = scale*sqrt(2) applies
        # to every layer (the fused-lrelu gain is folded into the next matmul).
        act_ref[...] = z_ref[...].astype(jnp.float32) * jnp.float32(1.0 / _SQRT2)

    x = act_ref[...]
    w = w_ref[0]  # (D, D) (in, out) -> natural (K, N) MXU layout, no relayout.
    # bf16 x bf16 -> f32 accumulation on the MXU.
    y = jnp.dot(x.astype(w.dtype), w, preferred_element_type=jnp.float32)
    y = y * jnp.float32(post_scale) + b_ref[0]  # (1, D) broadcasts over (bm, D)
    a = jnp.maximum(y, 0.2 * y)                 # leaky-ReLU, gain deferred

    @pl.when(layer < n_layers - 1)
    def _():
        act_ref[...] = a

    @pl.when(layer == n_layers - 1)
    def _():
        o_ref[...] = (a * jnp.float32(_SQRT2)).astype(o_ref.dtype)


def _batch_tile(B):
    """Largest lane/sublane-friendly batch tile that divides B."""
    for t in (512, 256, 128, 64, 32, 16, 8):
        if B % t == 0:
            return t
    return B  # small / odd batch: one full-extent block


def _vmem_limit_bytes(D, bm, z_itemsize, w_itemsize):
    """VMEM cap derived from the actual chip, with >=40% headroom."""
    try:
        cap = int(pltpu.get_tpu_info().vmem_capacity_bytes)
    except Exception:
        cap = 64 * 1024 * 1024  # conservative fallback (v7x per-core physical)
    cap_with_headroom = int(cap * 0.6)
    need = (
        2 * D * D * w_itemsize      # per-layer weight block, double-buffered
        + 2 * D * 4                 # per-layer bias block, double-buffered
        + 2 * bm * D * z_itemsize   # z block
        + 2 * bm * D * z_itemsize   # output block
        + bm * D * 4                # activation scratch
        + (1 << 20)                 # slack for Mosaic internal scratch
    )
    return int(min(cap_with_headroom, max(8 * 1024 * 1024, need)))


def prepare_emo_mapping_params(weights, biases, *, lr_mul,
                               compute_dtype=jnp.bfloat16):
    """One-time parameter transform (call once at load time, not per step).

    weights : (n_mlp, out_dim, in_dim)  PyTorch EqualLinear layout
    biases  : (n_mlp, out_dim)
    Returns (w_prepared, b_prepared):
      w_prepared : (n_mlp, in_dim, out_dim) in compute_dtype (bf16 by default)
      b_prepared : (n_mlp, 1, out_dim) f32, already multiplied by lr_mul
    """
    n_mlp, out_dim, _ = weights.shape
    w_prepared = jnp.swapaxes(weights, 1, 2).astype(compute_dtype)
    b_prepared = (biases.astype(jnp.float32) * lr_mul).reshape(n_mlp, 1, out_dim)
    return w_prepared, b_prepared


def emo_mapping_v1(z, w_prepared, b_prepared, *, lr_mul):
    """Pallas wrapper: z -> latent_net(z).

    z          : (B, D)
    w_prepared : (n_mlp, D, D)  (in_dim, out_dim) layout, from prepare_*()
    b_prepared : (n_mlp, 1, D)  bias * lr_mul, from prepare_*()
    """
    B, D = z.shape
    n_mlp = w_prepared.shape[0]
    scale = (1.0 / math.sqrt(D)) * lr_mul
    post_scale = scale * _SQRT2  # fused-lrelu gain folded into the matmul scale

    bm = _batch_tile(B)
    n_batch_tiles = B // bm
    grid = (n_batch_tiles, n_mlp)

    # Only shard the batch axis across TensorCores when there is enough work
    # per core; otherwise megacore just doubles weight DMA (v7x).
    batch_sem = "parallel" if n_batch_tiles >= 8 else "arbitrary"

    kernel = functools.partial(_emo_mapping_kernel, post_scale=post_scale)

    vmem_limit = _vmem_limit_bytes(D, bm, z.dtype.itemsize,
                                   w_prepared.dtype.itemsize)

    cost = pl.CostEstimate(
        flops=2 * n_mlp * B * D * D,
        transcendentals=0,
        bytes_accessed=(z.size * z.dtype.itemsize
                        + w_prepared.size * w_prepared.dtype.itemsize
                        + b_prepared.size * b_prepared.dtype.itemsize
                        + B * D * z.dtype.itemsize),
    )

    return pl.pallas_call(
        kernel,
        out_shape=jax.ShapeDtypeStruct((B, D), z.dtype),
        grid=grid,
        in_specs=[
            pl.BlockSpec((bm, D), lambda b, l: (b, 0)),        # z (resident over l)
            pl.BlockSpec((1, D, D), lambda b, l: (l, 0, 0)),   # per-layer weight
            pl.BlockSpec((1, 1, D), lambda b, l: (l, 0, 0)),   # per-layer bias
        ],
        out_specs=pl.BlockSpec((bm, D), lambda b, l: (b, 0)),
        scratch_shapes=[pltpu.VMEM((bm, D), jnp.float32)],     # activation carry
        compiler_params=pltpu.CompilerParams(
            dimension_semantics=(batch_sem, "arbitrary"),
            vmem_limit_bytes=vmem_limit,
        ),
        cost_estimate=cost,
    )(z, w_prepared, b_prepared)


def emo_mapping_ref_f32(z, weights, biases, *, lr_mul):
    """Pure-JAX f32 reference of latent_net(z) (exact module semantics)."""
    D = z.shape[-1]
    scale = (1.0 / math.sqrt(D)) * lr_mul
    x = z.astype(jnp.float32)
    for layer in range(weights.shape[0]):
        w = weights[layer].astype(jnp.float32) * scale      # (out, in)
        b = biases[layer].astype(jnp.float32) * lr_mul
        y = x @ w.T + b[None, :]
        x = jnp.where(y >= 0.0, y, 0.2 * y) * _SQRT2
    return x.astype(z.dtype)


def emo_mapping_ref_quantized(z, w_prepared, b_prepared, *, lr_mul):
    """Reference that mirrors the kernel's bf16 quantization exactly
    (validates the kernel's grid / BlockSpec / scratch plumbing tightly)."""
    D = z.shape[-1]
    post_scale = (lr_mul / math.sqrt(D)) * _SQRT2
    x = z.astype(jnp.float32) * (1.0 / _SQRT2)
    for layer in range(w_prepared.shape[0]):
        w = w_prepared[layer]                               # (in, out)
        y = jnp.dot(x.astype(w.dtype), w, preferred_element_type=jnp.float32)
        y = y * post_scale + b_prepared[layer, 0]
        x = jnp.maximum(y, 0.2 * y)
    return (x * _SQRT2).astype(z.dtype)


if __name__ == "__main__":
    latent_dim = 128   # lane-aligned latent size
    n_mlp = 4
    lr_mlp = 0.01
    batch = 8          # sublane-aligned batch

    key = jax.random.PRNGKey(0)
    kz, kw, kb = jax.random.split(key, 3)

    z = jax.random.normal(kz, (batch, latent_dim), dtype=jnp.float32)
    # EqualLinear init: weight = randn(out, in) / lr_mul ; bias = zeros.
    # (We randomize the bias slightly here to exercise the bias path.)
    weights = (
        jax.random.normal(kw, (n_mlp, latent_dim, latent_dim), dtype=jnp.float32)
        / lr_mlp
    )
    biases = 0.1 * jax.random.normal(kb, (n_mlp, latent_dim), dtype=jnp.float32)

    # One-time parameter prep (transpose to (in, out) + bf16 + bias*lr_mul).
    w_prep, b_prep = prepare_emo_mapping_params(weights, biases, lr_mul=lr_mlp)

    out = emo_mapping_v1(z, w_prep, b_prep, lr_mul=lr_mlp)
    out = jax.block_until_ready(out)
    assert out.shape == (batch, latent_dim)

    # Tight check against a reference that uses the identical bf16 quantization.
    ref_q = emo_mapping_ref_quantized(z, w_prep, b_prep, lr_mul=lr_mlp)
    assert jnp.allclose(out, ref_q, atol=2e-3, rtol=2e-3), \
        "mismatch vs bf16-matched reference"

    # Loose check against exact f32 module semantics (bf16 weight/act rounding).
    ref_f32 = emo_mapping_ref_f32(z, weights, biases, lr_mul=lr_mlp)
    assert jnp.allclose(out, ref_f32, atol=1e-1, rtol=1e-1), \
        "mismatch vs f32 module reference"

    print("KERNEL_OK")
</pallas_src>

<mosaic_0001>
module attributes {stable_mosaic.version = 11 : i64} {
  func.func @_emo_mapping_kernel(%arg0: i32, %arg1: i32, %arg2: memref<8x128xf32, #tpu.memory_space<vmem>>, %arg3: memref<1x128x128xbf16, #tpu.memory_space<vmem>>, %arg4: memref<1x1x128xf32, #tpu.memory_space<vmem>>, %arg5: memref<8x128xf32, #tpu.memory_space<vmem>>, %arg6: memref<8x128xf32, #tpu.memory_space<vmem>>) attributes {dimension_semantics = [#tpu.dimension_semantics<arbitrary>, #tpu.dimension_semantics<arbitrary>], iteration_bounds = array<i64: 1, 4>, scalar_prefetch = 0 : i64, scratch_operands = 1 : i64, tpu.core_type = #tpu.core_type<tc>, window_params = [{transform_indices = @transform_0, window_bounds = array<i64: 8, 128>}, {transform_indices = @transform_1, window_bounds = array<i64: 1, 128, 128>}, {transform_indices = @transform_2, window_bounds = array<i64: 1, 1, 128>}, {transform_indices = @transform_3, window_bounds = array<i64: 8, 128>}]} {
    %c0_i32 = arith.constant 0 : i32
    %0 = arith.cmpi eq, %arg1, %c0_i32 : i32
    %1 = arith.extui %0 : i1 to i32
    %c0_i32_0 = arith.constant 0 : i32
    %2 = arith.cmpi ne, %1, %c0_i32_0 : i32
    scf.if %2 {
      %c0_13 = arith.constant 0 : index
      %c0_14 = arith.constant 0 : index
      %23 = vector.load %arg2[%c0_13, %c0_14] : memref<8x128xf32, #tpu.memory_space<vmem>>, vector<8x128xf32>
      %cst_15 = arith.constant 0.707106769 : f32
      %24 = vector.broadcast %cst_15 : f32 to vector<8x128xf32>
      %25 = arith.mulf %23, %24 : vector<8x128xf32>
      %c0_16 = arith.constant 0 : index
      %c0_17 = arith.constant 0 : index
      %26 = vector.load %arg6[%c0_16, %c0_17] : memref<8x128xf32, #tpu.memory_space<vmem>>, vector<8x128xf32>
      tpu.vector_store %arg6[%c0_16, %c0_17], %25 {strides = array<i32>} : memref<8x128xf32, #tpu.memory_space<vmem>>, vector<8x128xf32>,
    } else {
    }
    %c0 = arith.constant 0 : index
    %c0_1 = arith.constant 0 : index
    %3 = vector.load %arg6[%c0, %c0_1] : memref<8x128xf32, #tpu.memory_space<vmem>>, vector<8x128xf32>
    %c0_2 = arith.constant 0 : index
    %c0_3 = arith.constant 0 : index
    %c0_4 = arith.constant 0 : index
    %4 = vector.load %arg3[%c0_2, %c0_3, %c0_4] : memref<1x128x128xbf16, #tpu.memory_space<vmem>>, vector<1x128x128xbf16>
    %5 = vector.shape_cast %4 : vector<1x128x128xbf16> to vector<128x128xbf16>
    %6 = arith.truncf %3 : vector<8x128xf32> to vector<8x128xbf16>
    %cst = arith.constant dense<0.000000e+00> : vector<8x128xf32>
    %7 = tpu.matmul %6, %5, %cst {dimension_numbers = #tpu.dot_dimension_numbers<[1], [0], [0], [1], [0, 0, 1, 1], [], []>} : vector<8x128xbf16>, vector<128x128xbf16>, vector<8x128xf32> -> vector<8x128xf32>
    %cst_5 = arith.constant 1.250000e-03 : f32
    %8 = vector.broadcast %cst_5 : f32 to vector<8x128xf32>
    %9 = arith.mulf %7, %8 : vector<8x128xf32>
    %c0_6 = arith.constant 0 : index
    %c0_7 = arith.constant 0 : index
    %c0_8 = arith.constant 0 : index
    %10 = vector.load %arg4[%c0_6, %c0_7, %c0_8] : memref<1x1x128xf32, #tpu.memory_space<vmem>>, vector<1x1x128xf32>
    %11 = vector.shape_cast %10 : vector<1x1x128xf32> to vector<1x128xf32>
    %12 = vector.broadcast %11 : vector<1x128xf32> to vector<8x128xf32>
    %13 = arith.addf %9, %12 : vector<8x128xf32>
    %cst_9 = arith.constant 2.000000e-01 : f32
    %14 = vector.broadcast %cst_9 : f32 to vector<8x128xf32>
    %15 = arith.mulf %14, %13 : vector<8x128xf32>
    %16 = arith.maximumf %13, %15 : vector<8x128xf32>
    %c3_i32 = arith.constant 3 : i32
    %17 = arith.cmpi slt, %arg1, %c3_i32 : i32
    %18 = arith.extui %17 : i1 to i32
    %c0_i32_10 = arith.constant 0 : i32
    %19 = arith.cmpi ne, %18, %c0_i32_10 : i32
    scf.if %19 {
      %c0_13 = arith.constant 0 : index
      %c0_14 = arith.constant 0 : index
      %23 = vector.load %arg6[%c0_13, %c0_14] : memref<8x128xf32, #tpu.memory_space<vmem>>, vector<8x128xf32>
      tpu.vector_store %arg6[%c0_13, %c0_14], %16 {strides = array<i32>} : memref<8x128xf32, #tpu.memory_space<vmem>>, vector<8x128xf32>,
    } else {
    }
    %c3_i32_11 = arith.constant 3 : i32
    %20 = arith.cmpi eq, %arg1, %c3_i32_11 : i32
    %21 = arith.extui %20 : i1 to i32
    %c0_i32_12 = arith.constant 0 : i32
    %22 = arith.cmpi ne, %21, %c0_i32_12 : i32
    scf.if %22 {
      %cst_13 = arith.constant 1.41421354 : f32
      %23 = vector.broadcast %cst_13 : f32 to vector<8x128xf32>
      %24 = arith.mulf %16, %23 : vector<8x128xf32>
      %c0_14 = arith.constant 0 : index
      %c0_15 = arith.constant 0 : index
      %25 = vector.load %arg5[%c0_14, %c0_15] : memref<8x128xf32, #tpu.memory_space<vmem>>, vector<8x128xf32>
      tpu.vector_store %arg5[%c0_14, %c0_15], %24 {strides = array<i32>} : memref<8x128xf32, #tpu.memory_space<vmem>>, vector<8x128xf32>,
    } else {
    }
    return
  }
  func.func @transform_0(%arg0: i32, %arg1: i32) -> (i32, i32) {
    %c0_i32 = arith.constant 0 : i32
    %c0_i32_0 = arith.constant 0 : i32
    return %arg0, %c0_i32 : i32, i32
  }
  func.func @transform_1(%arg0: i32, %arg1: i32) -> (i32, i32, i32) {
    %c0_i32 = arith.constant 0 : i32
    %c0_i32_0 = arith.constant 0 : i32
    %c0_i32_1 = arith.constant 0 : i32
    return %arg1, %c0_i32, %c0_i32_0 : i32, i32, i32
  }
  func.func @transform_2(%arg0: i32, %arg1: i32) -> (i32, i32, i32) {
    %c0_i32 = arith.constant 0 : i32
    %c0_i32_0 = arith.constant 0 : i32
    %c0_i32_1 = arith.constant 0 : i32
    return %arg1, %c0_i32, %c0_i32_0 : i32, i32, i32
  }
  func.func @transform_3(%arg0: i32, %arg1: i32) -> (i32, i32) {
    %c0_i32 = arith.constant 0 : i32
    %c0_i32_0 = arith.constant 0 : i32
    return %arg0, %c0_i32 : i32, i32
  }
}

</mosaic_0001>

<bundles_post_ra>
// kernel: tpu_custom_call.1
= control target key start
LH: loop header
LB: loop body
LE: loop exit
PB: predicated region body
PF: predicated region fallthrough
CT: control target
= control target key end

     0   :  { %8 = vsyncpa [#allocation4], 0  ;;  %s983_s0 = inlined_call_operand.hbm [shape: f32[8,128], index: 0, kind: input, shape index: {}]   ;;  %s984_s1 = inlined_call_operand.hbm [shape: bf16[4,128,128], index: 1, kind: input, shape index: {}]   ;;  %s985_s2 = inlined_call_operand.hbm [shape: f32[4,1,128], index: 2, kind: input, shape index: {}]   ;;  %s986_s3 = inlined_call_operand.hbm [shape: f32[8,128], index: 3, kind: output, shape index: {}]  }
   0x1   :  { %9 = vsyncpa [#allocation7], 0 }
   0x2   :  { %11 = vsyncpa [#allocation7 + $0x1], 0 }
   0x3   :  { %12 = vsyncpa [#allocation5], 0  ;;  %s823_s12 = smov 0   ;;  %s825_s13 = smov 0  }
   0x4   :  { %s827_s14 = smov 0   ;;  %s829_s15 = smov 0  }
   0x5   :  { %s831_s16 = smov 0   ;;  %s833_s17 = smov 0  }
   0x6 LB: > { %s27_s18 = sadd.s32 1, %s789_s16  ;;  %s63_s19 = sadd.s32 1, %s781_s14  ;;  %s793_s17 = sphi %s833_s17, %s18_s17   ;;  %s789_s16 = sphi %s831_s16, %s1003_s16   ;;  %s785_s15 = sphi %s829_s15, %s1002_s15   ;;  %s781_s14 = sphi %s827_s14, %s1001_s14   ;;  %s777_s13 = sphi %s825_s13, %s1000_s13   ;;  %s773_s12 = sphi %s823_s12, %s999_s12  }
   0x7   : > { %p28_p0 = scmp.ge.s32.totalorder %s27_s18, 4  ;;  %p70_p1 = scmp.ne.s32.totalorder %s781_s14, %s777_s13 }
   0x8   : > { %p71_p2 = scmp.eq.s32.totalorder %s793_s17, 0  ;;  %p563_p4 = scmp.lt.s32.totalorder %s793_s17, 4 }
   0x9   : > { %s1005_s18 = smov (%p28_p0, %s27_s18), 0  ;;  %s165_s21 = sand.u32 1, %s793_s17  }
   0xa   : > { %p72_p3 = por %p71_p2, %p70_p1  ;;  %s60_s20 = ssub.s32 %s789_s16, %s1005_s18 }
   0xb   : > { %p61_p5 = scmp.eq.s32.totalorder %s60_s20, 0  ;;  %s167_s22 = sand.u32 1, %s781_s14  }
   0xc   : > { %s509_s23 = sshll.u32 %s789_s16, 10  ;;  %s486_s25 = sshll.u32 %s167_s22, 6 }
   0xd   : > { %s867_s24 = scalar_select %p61_p5, %s781_s14, %s63_s19  }
   0xe   : > { %s175_s28 = scalar_lea.hbm %s984_s1, %s509_s23  ;;  %p874_p6 = pnand %p563_p4, %p72_p3 }
   0xf   : > { %s169_s30 = scalar_lea.vmem [#allocation6], %s486_s25  ;;  %s878_s5 = scalar_lea.sflag [#allocation7], %s165_s21 }
  0x10   : > { %s176_s4 = sshll.u32 %s169_s30, 4  ;;  %p987_p7 = pneg %p874_p6  ;;  %s177_s4 = int_to_ptr.vmem [resolvable:$true] %s176_s4 }
  0x11   : > { %s642_s6 = scalar_lea.vmem %s177_s4, 1024  ;;  %s795_s7 = smov [#allocation6]  }
  0x12   : > { %p643_p8 = scmp.ne.s32.totalorder %s177_s4, %s642_s6  ;;  %s647_s8 = sshll.u32 %s795_s7, 4  ;;  %s648_s8 = int_to_ptr.vmem [resolvable:$false] %s647_s8 }
  0x13   : > { %s649_s9 = scalar_lea.vmem %s648_s8, 2048  ;;  %p650_p11 = scmp.lt.s32.totalorder %s177_s4, %s648_s8 }
  0x14   : > { %p645_p9 = pnand %p643_p8, %p987_p7  ;;  %p651_p12 = scmp.lt.s32.totalorder %s649_s9, %s642_s6 }
  0x16   : > { %p646_p10 = pneg %p645_p9  ;;  %p652_p13 = por %p651_p12, %p650_p11 }
  0x18   : > { %p653_p0 = pnand %p652_p13, %p646_p10 }
  0x1a   : > { %656 = shalt.err (!%p653_p0)
}
  0x1b   : > { %s796_s10 = smov 64   ;;  %s797_s11 = smov 4  }
  0x1c   : > { %558 = dma.hbm_to_vmem [thread:$0]  (!%p874_p6), %s175_s28, 1024, %s177_s4, %s878_s5, %s796_s10, %s796_s10, %s797_s11  }
  0x1d   : > { %s889_s19 = sadd.s32 4294967295, %s793_s17   ;;  %p76_p1 = scmp.ne.s32.totalorder %s777_s13, %s773_s12 }
  0x1e   : > { %p988_p2 = scmp.eq.s32.totalorder %s889_s19, 0  ;;  %p483_p3 = scmp.ge.s32.totalorder %s793_s17, 1 }
  0x1f   : > { %p139_p4 = scmp.lt.s32.totalorder %s793_s17, 5  ;;  %s798_s23 = smov [#allocation3]  }
  0x20   : > { %p898_p5 = por %p988_p2, %p76_p1  ;;  %s154_s25 = sshll.u32 %s798_s23, 4  ;;  %s155_s25 = int_to_ptr.vmem [resolvable:$true] %s154_s25 }
  0x21   : > { %p902_p8 = pnand %p483_p3, %p139_p4  ;;  %s489_s26 = sshll.u32 %s789_s16, 4 }
  0x22   : > { %s992_s20 = scalar_select %p898_p5, 1, 0 }
  0x23   : > { %s993_s21 = scalar_select %p902_p8, 1, 0 }
  0x24   : > { %p551_p9 = pneg %p902_p8  ;;  %s189_s12 = scalar_lea.vmem [#allocation8], %s167_s22 }
  0x25   : > { %s196_s27 = sshll.u32 %s189_s12, 4  ;;  %s194_s4 = scalar_lea.hbm %s985_s2, %s489_s26  ;;  %s197_s27 = int_to_ptr.vmem [resolvable:$true] %s196_s27 }
  0x26   : > { %p552_p10 = pnand %p551_p9, %p988_p2  ;;  %s668_s6 = scalar_lea.vmem %s155_s25, 128 }
  0x27   : > { %p669_p12 = scmp.ne.s32.totalorder %s155_s25, %s668_s6  ;;  %p676_p1 = scmp.lt.s32.totalorder %s155_s25, %s155_s25 }
  0x28   : > { %p659_p11 = pneg %p552_p10  ;;  %p677_p3 = scmp.lt.s32.totalorder %s668_s6, %s668_s6 }
  0x2a   : > { %p671_p13 = pnand %p669_p12, %p659_p11  ;;  %p678_p4 = por %p677_p3, %p676_p1 }
  0x2c   : > { %p672_p0 = pneg %p671_p13 }
  0x2e   : > { %p679_p7 = pnand %p678_p4, %p672_p0 }
  0x30   : > { %682 = shalt.err (!%p679_p7)
}
  0x31   : > { %554 = dma.hbm_to_vmem [thread:$0]  (!%p552_p10), %s983_s0, 128, %s155_s25, [#allocation4]  }
  0x32   : > { %s696_s8 = scalar_lea.vmem %s197_s27, 16  ;;  %p994_p2 = pneg %p874_p6 }
  0x33   : > { %p697_p9 = scmp.ne.s32.totalorder %s197_s27, %s696_s8  ;;  %s799_s9 = smov [#allocation8]  }
  0x34   : > { %s701_s10 = sshll.u32 %s799_s9, 4  ;;  %s702_s10 = int_to_ptr.vmem [resolvable:$false] %s701_s10 }
  0x35   : > { %p699_p5 = pnand %p697_p9, %p994_p2  ;;  %s703_s11 = scalar_lea.vmem %s702_s10, 32 }
  0x36   : > { %p704_p11 = scmp.lt.s32.totalorder %s197_s27, %s702_s10  ;;  %p705_p12 = scmp.lt.s32.totalorder %s703_s11, %s696_s8 }
  0x37   : > { %p700_p8 = pneg %p699_p5 }
  0x38   : > { %p706_p13 = por %p705_p12, %p704_p11 }
  0x3a   : > { %p707_p0 = pnand %p706_p13, %p700_p8 }
  0x3c   : > { %710 = shalt.err (!%p707_p0)
}
  0x3d   : > { %561 = dma.hbm_to_vmem [thread:$0]  (!%p874_p6), %s194_s4, 16, %s197_s27, %s878_s5  }
  0x3e   : > { %p995_p7 = scmp.ne.s32.totalorder %s993_s21, 0 }
  0x3f   : > { %p996_p10 = scmp.eq.s32.totalorder (!%p995_p7), %s889_s19, 0 }
  0x40   : > { %205 = sbr.rel (%p995_p7) target bundleno = 346 (0x15a), region = 32 }
  0x45   : > { %760 = dma.done.wait (%p996_p10), [#allocation4], 128   ;;  %p997_p2 = pmov %p996_p10 }
  0x46   : > { %s211_s23 = sand.u32 1, %s889_s19   ;;  %s213_s25 = sand.u32 1, %s777_s13  }
  0x47   : > { %762 = vsyncadd (%p997_p2), [#allocation4], 4294967168  ;;  %s492_s26 = sshll.u32 %s213_s25, 6  ;;  %s212_s12 = scalar_lea.sflag [#allocation7], %s211_s23 }
  0x48   : > { %s933_s28 = scalar_lea.vmem [#allocation6], %s492_s26  ;;  %p998_p5 = scmp.ne.s32.totalorder %s992_s20, 0 }
  0x4a   : > { %764 = dma.done.wait (%p998_p5), %s212_s12, 1040  }
  0x4b   : > { %766 = vsyncadd (%p998_p5), %s212_s12, 4294966256  ;;  %s939_s29 = scalar_lea.vmem [#allocation8], %s213_s25  ;;  %p493_p6 = scmp.ne.s32.totalorder %s785_s15, 0 }
  0x4d   : > { %249 = sbr.rel (%p493_p6) target bundleno = 86 (0x56), region = 48 }
  0x52   : > { %v250_v0 = vld [vmem:[#allocation3] sm:$0xff] }
  0x53   : > { %v251_v1 = vmul.f32 0.70710677, %v250_v0 }
  0x55   : > { %252 = vst [vmem:[#allocation2] sm:$0xff] %v251_v1 }
  0x56 PF: > { %v621_v2 = vld [vmem:[%s933_s28 + $0x38] sm:$0xff]   ;;  %v800_v3 = vmov 0.0   ;;  %v622_v4 = vld [vmem:[%s933_s28 + $0x30] sm:$0xff]   ;;  %vm801_vm0 = vmmov 0   ;;  %v623_v5 = vld [vmem:[%s933_s28 + $0x28] sm:$0xff]   ;;  %p503_p8 = scmp.ge.s32.totalorder %s785_s15, 3 }
  0x57   : > { %519 = vmatprep.subr.bf16.mxu0 %v800_v3  ;;  %535 = vmatprep.mubr.msk.bf16.mxu0 %vm801_vm0, %v800_v3  ;;  %v624_v6 = vld [vmem:[%s933_s28 + $0x20] sm:$0xff]   ;;  %v625_v7 = vld [vmem:[%s933_s28 + $0x18] sm:$0xff]   ;;  %v626_v8 = vld [vmem:[%s933_s28 + $0x10] sm:$0xff]  }
  0x58   : > { %520 = vmatpush3.bf16.msra.mxu0 %v621_v2  ;;  %v627_v9 = vld [vmem:[%s933_s28 + $0x8] sm:$0xff]   ;;  %v628_v10 = vld [vmem:[%s933_s28] sm:$0xff]   ;;  %v502_v14 = vld [vmem:[%s939_s29] ss:$0 sm:$0xff] }
  0x59   : > { %521 = vmatprep.subr.bf16.mxu0 %v800_v3 }
  0x5c   : > { %522 = vmatpush3.bf16.msra.mxu0 %v622_v4  ;;  %v253_v11 = vld [vmem:[#allocation2] sm:$0xff] }
  0x5d   : > { %523 = vmatprep.subr.bf16.mxu0 %v800_v3  ;;  %v270_v12 = vpack.c.bf16 %v253_v11, %v253_v11 }
  0x60   : > { %524 = vmatpush3.bf16.msra.mxu0 %v623_v5 }
  0x61   : > { %525 = vmatprep.subr.bf16.mxu0 %v800_v3 }
  0x64   : > { %526 = vmatpush3.bf16.msra.mxu0 %v624_v6 }
  0x65   : > { %527 = vmatprep.subr.bf16.mxu0 %v800_v3 }
  0x68   : > { %528 = vmatpush3.bf16.msra.mxu0 %v625_v7 }
  0x69   : > { %529 = vmatprep.subr.bf16.mxu0 %v800_v3 }
  0x6c   : > { %530 = vmatpush3.bf16.msra.mxu0 %v626_v8 }
  0x6d   : > { %531 = vmatprep.subr.bf16.mxu0 %v800_v3 }
  0x70   : > { %532 = vmatpush3.bf16.msra.mxu0 %v627_v9 }
  0x71   : > { %533 = vmatprep.subr.bf16.mxu0 %v800_v3 }
  0x74   : > { %534 = vmatpush3.bf16.msra.mxu0 %v628_v10 }
  0x77   : > { %536 = vmatmul.mubr.bf16.vlgmr.msra.gmra.mxu0 %v270_v12 }
 0x137   : > { %v353_v13 = vpop.f32.mrf.mxu0 }
 0x138   : > { %v359_v15 = vmul.f32 0.00125, %v353_v13 }
 0x139   : > { %v537_v16 = vpop.f32.mrf.mxu0 }
 0x13a   : > { %v367_v17 = vadd.f32 %v502_v14, %v359_v15  ;;  %373 = sbr.rel (%p503_p8) target bundleno = 321 (0x141), region = 52 }
 0x13b   : > { %v356_v18 = vpop.f32.mrf.mxu0 }
 0x13c   : > { %v368_v19 = vmul.f32 0.2, %v367_v17 }
 0x13d   : > { %v538_v20 = vpop.f32.mrf.mxu0 }
 0x13e   : > { %v369_v21 = vmax.f32 %v367_v17, %v368_v19 }
 0x140   : > { %374 = vst [vmem:[#allocation2] sm:$0xff] %v369_v21 }
 0x141 PF: > { %p504_p1 = scmp.ne.s32.totalorder %s785_s15, 3 }
 0x143   : > { %378 = sbr.rel (%p504_p1) target bundleno = 331 (0x14b), region = 56 }
 0x148   : > { %v379_v22 = vmul.f32 1.4142135, %v369_v21 }
 0x14a   : > { %380 = vst [vmem:[#allocation9] sm:$0xff] %v379_v22 }
 0x14b PF: > { %p565_p3 = scmp.eq.s32.totalorder %s889_s19, 3  ;;  %s802_s5 = smov [#allocation9]  }
 0x14c   : > { %s390_s20 = sshll.u32 %s802_s5, 4  ;;  %s391_s20 = int_to_ptr.vmem [resolvable:$true] %s390_s20 }
 0x14d   : > { %s711_s21 = scalar_lea.vmem %s391_s20, 128  ;;  %p718_p12 = scmp.lt.s32.totalorder %s391_s20, %s391_s20 }
 0x14e   : > { %p712_p4 = scmp.ne.s32.totalorder %s391_s20, %s711_s21  ;;  %p719_p13 = scmp.lt.s32.totalorder %s711_s21, %s711_s21 }
 0x150   : > { %p713_p9 = pnand %p712_p4, %p565_p3  ;;  %p720_p0 = por %p719_p13, %p718_p12 }
 0x152   : > { %p714_p11 = pneg %p713_p9 }
 0x154   : > { %p721_p7 = pnand %p720_p0, %p714_p11 }
 0x156   : > { %724 = shalt.err (!%p721_p7)
}
 0x157   : > { %548 = dma.vmem_to_hbm [thread:$0]  (%p565_p3), %s391_s20, 128, %s986_s3, [#allocation5]  }
 0x158   : > { %768 = dma.done.wait (%p565_p3), [#allocation5], 128  }
 0x159   : > { %770 = vsyncadd (%p565_p3), [#allocation5], 4294967168 }
 0x15a PF: > { %s18_s17 = sadd.s32 1, %s793_s17   ;;  %s999_s12 = smov %s777_s13 }
 0x15b   : > { %p15_p10 = scmp.ge.s32.totalorder %s18_s17, 6   ;;  %s1000_s13 = smov %s781_s14 }
 0x15c   : > { %s1001_s14 = smov %s867_s24  ;;  %s1002_s15 = smov %s789_s16 }
 0x15d   : > { %s1003_s16 = smov %s1005_s18  ;;  %17 = sbr.rel (!%p15_p10) target bundleno = 6 (0x6), region = 99 }
 0x162   :  { %403 = vsyncpa [#allocation4], 1 }
 0x163   :  { %405 = vsyncpa [#allocation4 + $0x1], 1 }
 0x164   :  { %406 = vsyncpa [#allocation7], 1 }
 0x165   :  { %408 = vsyncpa [#allocation7 + $0x1], 1 }
 0x166   :  { %409 = vsyncpa [#allocation5], 1 }
 0x167   :  { %411 = vsyncpa [#allocation5 + $0x1], 1 }

</bundles_post_ra>
